<compile_context>
chip_gen: v6e
topology: v6e:2x2x1
jax: 0.10.0
libtpu: 0.0.40
codegen_flags: <defaults>
</compile_context>

<pallas_src>
import functools
import math

import jax
import jax.numpy as jnp
from jax import lax
from jax.experimental import pallas as pl
from jax.experimental.pallas import tpu as pltpu


def _round_up(x, m):
    return ((x + m - 1) // m) * m


# -----------------------------------------------------------------------------
# Pass 1: fused Q/K/V projection.
#   x:[tq, d_in_pad] contracted with W_qkv:[3*d_out_pad, d_in_pad] over d_in,
#   producing one fused [tq, 3*d_out_pad] QKV tile (Q pre-scaled by 1/sqrt(d)).
# -----------------------------------------------------------------------------
def _qkv_proj_kernel(x_ref, w_ref, qkv_ref):
    qkv_ref[...] = lax.dot_general(
        x_ref[...], w_ref[...], (((1,), (1,)), ((), ())),
        preferred_element_type=jnp.float32,
    ).astype(qkv_ref.dtype)


# -----------------------------------------------------------------------------
# Pass 2: flash attention (no causal mask — SelfAttention_v2 has none).
# -----------------------------------------------------------------------------
def _flash_attn_kernel(q_ref, k_ref, v_ref, o_ref, m_sc, l_sc, acc_sc,
                       *, seq_len, tk, needs_mask):
    kv = pl.program_id(1)
    n_kv = pl.num_programs(1)

    @pl.when(kv == 0)
    def _():
        m_sc[...] = jnp.full_like(m_sc, -jnp.inf)
        l_sc[...] = jnp.zeros_like(l_sc)
        acc_sc[...] = jnp.zeros_like(acc_sc)

    def step(apply_mask):
        # Scores. Q was pre-scaled by 1/sqrt(d_out) in pass 1, so no `* scale`
        # here. bf16 operands feed the MXU directly; accumulate in f32.
        # TODO(synk): check bundle dump for a per-step vxpose of the K tile
        # from this (1,1) contraction; if present, store K transposed from
        # pass 1 and contract (((1,),(0,))) instead.
        s = lax.dot_general(
            q_ref[...], k_ref[...], (((1,), (1,)), ((), ())),
            preferred_element_type=jnp.float32,
        )                                            # [tq, tk]

        if apply_mask:
            # Mask zero-padded key positions. NOTE: sentinel is a large
            # negative, NOT -inf: kv tile 0 always contains real keys, so m is
            # finite before any padded column and exp(-1e30 - m) underflows to
            # exactly 0; -inf could produce NaN via (-inf) - (-inf).
            key_ids = kv * tk + lax.broadcasted_iota(jnp.int32, s.shape, 1)
            s = jnp.where(key_ids < seq_len, s, -1e30)

        m_prev = m_sc[...]
        m_new = jnp.maximum(m_prev, jnp.max(s, axis=-1, keepdims=True))
        alpha = jnp.exp(m_prev - m_new)
        p = jnp.exp(s - m_new)
        l_sc[...] = alpha * l_sc[...] + jnp.sum(p, axis=-1, keepdims=True)
        acc_sc[...] = alpha * acc_sc[...] + jnp.dot(
            p.astype(v_ref.dtype), v_ref[...],
            preferred_element_type=jnp.float32)
        m_sc[...] = m_new

    if needs_mask:
        # Padding (< tk keys) can only live in the final kv tile; every other
        # step skips the iota/compare/select VPU work entirely.
        @pl.when(kv == n_kv - 1)
        def _():
            step(True)

        @pl.when(kv != n_kv - 1)
        def _():
            step(False)
    else:
        step(False)

    @pl.when(kv == n_kv - 1)
    def _():
        # Exact division in the one-off finalize (free accuracy).
        o_ref[...] = (acc_sc[...] / l_sc[...]).astype(o_ref.dtype)


def self_attention_v2(x, w_query, w_key, w_value, *, tq=256, tk=512,
                      qkv_dtype=jnp.bfloat16, lane=128):
    """x: [T, d_in]; w_*: PyTorch nn.Linear weights of shape [d_out, d_in]."""
    T, d_in = x.shape
    d_out = w_query.shape[0]

    # Lane-dense minor dims.
    # TODO(synk): for tiny heads (d_out=2 in the demo) this 128-padding of
    # Q/K/V dominates HBM traffic at large T; an unpadded minor-dim variant
    # (full-dim blocks are exempt from the 128 rule) would avoid it, but the
    # padded layout is kept for matmul-lowering robustness.
    d_in_pad = _round_up(d_in, lane)
    d_out_pad = _round_up(d_out, lane)

    # Adaptive sequence tiling: short sequences use a single 8-aligned tile;
    # long sequences use the big defaults (tq=256, tk=512). With the defaults,
    # T_pad is a multiple of 2*tq, so the "parallel" query grid axis has an
    # even tile count (keeps both v7x TensorCores busy).
    t8 = _round_up(T, 8)
    if t8 <= max(tq, tk):
        tq_eff = tk_eff = T_pad = t8
    else:
        tq_eff, tk_eff = tq, tk
        lcm = tq * tk // math.gcd(tq, tk)
        T_pad = _round_up(T, lcm)

    scale = 1.0 / math.sqrt(d_out)  # softmax(q k^T / keys.shape[-1] ** 0.5)

    x_p = jnp.pad(x, ((0, T_pad - T), (0, d_in_pad - d_in)))

    def _pad_w(w, s=1.0):
        w = jnp.asarray(w) * s
        return jnp.pad(w, ((0, d_out_pad - d_out), (0, d_in_pad - d_in)))

    # Row-concat keeps the [d_out, d_in] nn.Linear layout (contracted over
    # d_in in the kernel; no transpose materialized). The attention scale is
    # folded into W_query so Q comes out pre-scaled.
    w_qkv = jnp.concatenate(
        [_pad_w(w_query, scale), _pad_w(w_key), _pad_w(w_value)], axis=0
    )                                                # [3*d_out_pad, d_in_pad]

    # ---- Pass 1: fused one-shot QKV projection -> (T_pad, 3*d_out_pad) ----
    # TODO(synk): for d_in/d_out >~ 1.5-2k on v7x (64 MiB VMEM), tile d_in with
    # an f32 accumulator or single-buffer the constant-index weight spec.
    qkv = pl.pallas_call(
        _qkv_proj_kernel,
        out_shape=jax.ShapeDtypeStruct((T_pad, 3 * d_out_pad), qkv_dtype),
        grid=(T_pad // tq_eff,),
        in_specs=[
            pl.BlockSpec((tq_eff, d_in_pad), lambda i: (i, 0)),
            pl.BlockSpec((3 * d_out_pad, d_in_pad), lambda i: (0, 0)),
        ],
        out_specs=pl.BlockSpec((tq_eff, 3 * d_out_pad), lambda i: (i, 0)),
        compiler_params=pltpu.CompilerParams(
            dimension_semantics=("parallel",)),
    )(x_p, w_qkv)

    # ---- Pass 2: tiled flash attention with online softmax ----
    # Per-step VMEM estimate (double-buffered Q/K/V/out blocks + f32 scratch);
    # raise the scoped limit (v5e defaults to only 16 MiB) only when needed.
    qkv_bytes = jnp.dtype(qkv_dtype).itemsize
    out_bytes = jnp.dtype(x.dtype).itemsize
    step_bytes = (2 * (tq_eff + 2 * tk_eff) * d_out_pad * qkv_bytes
                  + 2 * tq_eff * d_out_pad * out_bytes
                  + (tq_eff * d_out_pad + 2 * tq_eff) * 4)
    vmem_limit = None
    if step_bytes > 12 * 1024 * 1024:
        vmem_limit = int(min(100 * 1024 * 1024, 4 * step_bytes))

    out_pad = pl.pallas_call(
        functools.partial(_flash_attn_kernel, seq_len=T, tk=tk_eff,
                          needs_mask=(T_pad != T)),
        out_shape=jax.ShapeDtypeStruct((T_pad, d_out_pad), x.dtype),
        grid=(T_pad // tq_eff, T_pad // tk_eff),
        in_specs=[
            # Q / K / V are column blocks 0 / 1 / 2 of the fused QKV array.
            pl.BlockSpec((tq_eff, d_out_pad), lambda qi, ki: (qi, 0)),
            pl.BlockSpec((tk_eff, d_out_pad), lambda qi, ki: (ki, 1)),
            pl.BlockSpec((tk_eff, d_out_pad), lambda qi, ki: (ki, 2)),
        ],
        out_specs=pl.BlockSpec((tq_eff, d_out_pad), lambda qi, ki: (qi, 0)),
        scratch_shapes=[
            pltpu.VMEM((tq_eff, 1), jnp.float32),          # running max m
            pltpu.VMEM((tq_eff, 1), jnp.float32),          # running denom l
            pltpu.VMEM((tq_eff, d_out_pad), jnp.float32),  # output accumulator
        ],
        compiler_params=pltpu.CompilerParams(
            dimension_semantics=("parallel", "arbitrary"),
            vmem_limit_bytes=vmem_limit),
    )(qkv, qkv, qkv)

    return out_pad[:T, :d_out]


def _reference(x, wq, wk, wv):
    q = x @ wq.T
    k = x @ wk.T
    v = x @ wv.T
    s = (q @ k.T) / (k.shape[-1] ** 0.5)
    w = jax.nn.softmax(s, axis=-1)
    return w @ v


if __name__ == "__main__":
    # Inputs exactly as in the PyTorch script: [6, 3] float32.
    inputs = jnp.array(
        [[0.43, 0.15, 0.89],
         [0.55, 0.87, 0.66],
         [0.57, 0.85, 0.64],
         [0.22, 0.58, 0.33],
         [0.77, 0.25, 0.10],
         [0.05, 0.80, 0.55]],
        dtype=jnp.float32,
    )

    d_in = inputs.shape[1]   # 3
    d_out = 2

    # Deterministic nn.Linear-style init: uniform in [-1/sqrt(d_in), 1/sqrt(d_in)].
    key = jax.random.PRNGKey(0)
    kq, kk, kv_key = jax.random.split(key, 3)
    bound = 1.0 / (d_in ** 0.5)
    w_query = jax.random.uniform(kq, (d_out, d_in), jnp.float32, -bound, bound)
    w_key = jax.random.uniform(kk, (d_out, d_in), jnp.float32, -bound, bound)
    w_value = jax.random.uniform(kv_key, (d_out, d_in), jnp.float32, -bound, bound)

    out = self_attention_v2(inputs, w_query, w_key, w_value)
    out = jax.block_until_ready(out)

    ref = _reference(inputs, w_query, w_key, w_value)
    assert out.shape == (inputs.shape[0], d_out)
    # bf16 Q/K/V MXU operands (f32 accumulation/softmax): ~1e-2 error budget.
    assert jnp.allclose(out, ref, atol=2e-2, rtol=2e-2), (out, ref)

    print("KERNEL_OK")
</pallas_src>

<mosaic_0001>
module attributes {stable_mosaic.version = 11 : i64} {
  func.func @_qkv_proj_kernel(%arg0: i32, %arg1: memref<8x128xf32, #tpu.memory_space<vmem>>, %arg2: memref<384x128xf32, #tpu.memory_space<vmem>>, %arg3: memref<8x384xbf16, #tpu.memory_space<vmem>>) attributes {dimension_semantics = [#tpu.dimension_semantics<parallel>], iteration_bounds = array<i64: 1>, scalar_prefetch = 0 : i64, scratch_operands = 0 : i64, tpu.core_type = #tpu.core_type<tc>, window_params = [{transform_indices = @transform_0, window_bounds = array<i64: 8, 128>}, {pipeline_mode = #tpu.pipeline_mode<synchronous>, transform_indices = @transform_1, window_bounds = array<i64: 384, 128>}, {transform_indices = @transform_2, window_bounds = array<i64: 8, 384>}]} {
    %c0 = arith.constant 0 : index
    %c0_0 = arith.constant 0 : index
    %0 = vector.load %arg1[%c0, %c0_0] : memref<8x128xf32, #tpu.memory_space<vmem>>, vector<8x128xf32>
    %c0_1 = arith.constant 0 : index
    %c0_2 = arith.constant 0 : index
    %1 = vector.load %arg2[%c0_1, %c0_2] : memref<384x128xf32, #tpu.memory_space<vmem>>, vector<384x128xf32>
    %cst = arith.constant dense<0.000000e+00> : vector<8x384xf32>
    %2 = tpu.matmul %0, %1, %cst {dimension_numbers = #tpu.dot_dimension_numbers<[1], [1], [0], [0], [0, 0, 1, 0], [], []>} : vector<8x128xf32>, vector<384x128xf32>, vector<8x384xf32> -> vector<8x384xf32>
    %3 = arith.truncf %2 : vector<8x384xf32> to vector<8x384xbf16>
    %c0_3 = arith.constant 0 : index
    %c0_4 = arith.constant 0 : index
    %4 = vector.load %arg3[%c0_3, %c0_4] : memref<8x384xbf16, #tpu.memory_space<vmem>>, vector<8x384xbf16>
    tpu.vector_store %arg3[%c0_3, %c0_4], %3 {strides = array<i32>} : memref<8x384xbf16, #tpu.memory_space<vmem>>, vector<8x384xbf16>,
    return
  }
  func.func @transform_0(%arg0: i32) -> (i32, i32) {
    %c0_i32 = arith.constant 0 : i32
    %c0_i32_0 = arith.constant 0 : i32
    return %arg0, %c0_i32 : i32, i32
  }
  func.func @transform_1(%arg0: i32) -> (i32, i32) {
    %c0_i32 = arith.constant 0 : i32
    %c0_i32_0 = arith.constant 0 : i32
    %c0_i32_1 = arith.constant 0 : i32
    return %c0_i32, %c0_i32_0 : i32, i32
  }
  func.func @transform_2(%arg0: i32) -> (i32, i32) {
    %c0_i32 = arith.constant 0 : i32
    %c0_i32_0 = arith.constant 0 : i32
    return %arg0, %c0_i32 : i32, i32
  }
}

</mosaic_0001>

<bundles_post_ra>
// kernel: tpu_custom_call.1
= control target key start
LH: loop header
LB: loop body
LE: loop exit
PB: predicated region body
PF: predicated region fallthrough
CT: control target
= control target key end

     0   :  { %7 = vsyncpa [#allocation3], 0  ;;  %s475_s0 = inlined_call_operand.hbm [shape: f32[8,128], index: 0, kind: input, shape index: {}]   ;;  %s476_s1 = inlined_call_operand.hbm [shape: f32[384,128], index: 1, kind: input, shape index: {}]   ;;  %s477_s2 = inlined_call_operand.hbm [shape: bf16[8,384], index: 2, kind: output, shape index: {}]  }
   0x1   :  { %8 = vsyncpa [#allocation6], 0 }
   0x2   :  { %9 = vsyncpa [#allocation4], 0  ;;  %s422_s9 = smov [#allocation2]   ;;  %s423_s11 = smov [#allocation5]  }
   0x3   :  { %s16_s10 = sshll.u32 %s422_s9, 4  ;;  %s25_s12 = sshll.u32 %s423_s11, 4  ;;  %s17_s10 = int_to_ptr.vmem [resolvable:$true] %s16_s10  ;;  %s26_s12 = int_to_ptr.vmem [resolvable:$true] %s25_s12 }
   0x4   :  { %s364_s13 = scalar_lea.vmem %s17_s10, 128  ;;  %p369_p1 = scmp.lt.s32.totalorder %s17_s10, %s17_s10 }
   0x5   :  { %p365_p0 = scmp.ne.s32.totalorder %s17_s10, %s364_s13  ;;  %p370_p2 = scmp.lt.s32.totalorder %s364_s13, %s364_s13 }
   0x7   :  { %p371_p3 = por %p370_p2, %p369_p1 }
   0x9   :  { %p372_p4 = pnand %p371_p3, %p365_p0 }
   0xb   :  { %375 = shalt.err (!%p372_p4)
}
   0xc   :  { %19 = dma.hbm_to_vmem [thread:$0]  %s475_s0, 128, %s17_s10, [#allocation3]  }
   0xd   :  { %s384_s16 = scalar_lea.vmem %s26_s12, 6144  ;;  %p389_p6 = scmp.lt.s32.totalorder %s26_s12, %s26_s12 }
   0xe   :  { %p385_p5 = scmp.ne.s32.totalorder %s26_s12, %s384_s16  ;;  %p390_p7 = scmp.lt.s32.totalorder %s384_s16, %s384_s16 }
  0x10   :  { %p391_p8 = por %p390_p7, %p389_p6 }
  0x12   :  { %p392_p9 = pnand %p391_p8, %p385_p5 }
  0x14   :  { %395 = shalt.err (!%p392_p9)
}
  0x15   :  { %s424_s17 = smov 128   ;;  %s425_s18 = smov 8  }
  0x16   :  { %31 = dma.hbm_to_vmem [thread:$0]  %s476_s1, 6144, %s26_s12, [#allocation6], %s424_s17, %s424_s17, %s425_s18  }
  0x17   :  { %416 = dma.done.wait [#allocation3], 128  }
  0x18   :  { %417 = vsyncadd [#allocation3], 4294967168 }
  0x19   :  { %418 = dma.done.wait [#allocation6], 6144  }
  0x1a   :  { %419 = vsyncadd [#allocation6], 4294961152  ;;  %v426_v0 = vmov 0.0   ;;  %vm427_vm0 = vmmov 0   ;;  %v70_v1 = vld [vmem:[#allocation5 + $0xf8] sm:$0xff]  ;;  %v69_v4 = vld [vmem:[#allocation5 + $0xf0] sm:$0xff] }
  0x1b   :  { %314 = vmatprep.subr.mxu1 %v426_v0  ;;  %346 = vmatprep.mubr.msk.f32.mxu1 %vm427_vm0, %v426_v0  ;;  %v54_v2 = vld [vmem:[#allocation5 + $0x78] sm:$0xff]  ;;  %v85_v5 = vld [vmem:[#allocation5 + $0x170] sm:$0xff]  ;;  %v68_v7 = vld [vmem:[#allocation5 + $0xe8] sm:$0xff]  ;;  %s428_s0 = smov [#allocation7]  }
  0x1c   :  { %v86_v3 = vld [vmem:[#allocation5 + $0x178] sm:$0xff]  ;;  %263 = vmatprep.subr.mxu0 %v70_v1  ;;  %v53_v6 = vld [vmem:[#allocation5 + $0x70] sm:$0xff]  ;;  %v84_v8 = vld [vmem:[#allocation5 + $0x168] sm:$0xff]  ;;  %s249_s1 = sshll.u32 %s428_s0, 4  ;;  %s250_s1 = int_to_ptr.vmem [resolvable:$true] %s249_s1 }
  0x1d   :  { %315 = vmatpush3.xpose.msra.mxu1 %v86_v3  ;;  %264 = vmatpush3.xpose.msra.mxu0 %v54_v2  ;;  %v52_v9 = vld [vmem:[#allocation5 + $0x68] sm:$0xff]  ;;  %v67_v10 = vld [vmem:[#allocation5 + $0xe0] sm:$0xff]  ;;  %v66_v13 = vld [vmem:[#allocation5 + $0xd8] sm:$0xff]  ;;  %s396_s21 = scalar_lea.vmem %s250_s1, 192  ;;  %p401_p11 = scmp.lt.s32.totalorder %s250_s1, %s250_s1 }
  0x1e   :  { %316 = vmatprep.subr.mxu1 %v426_v0  ;;  %265 = vmatprep.subr.mxu0 %v69_v4  ;;  %v83_v11 = vld [vmem:[#allocation5 + $0x160] sm:$0xff]  ;;  %v82_v14 = vld [vmem:[#allocation5 + $0x158] sm:$0xff]  ;;  %v65_v16 = vld [vmem:[#allocation5 + $0xd0] sm:$0xff]  ;;  %p397_p10 = scmp.ne.s32.totalorder %s250_s1, %s396_s21  ;;  %p402_p12 = scmp.lt.s32.totalorder %s396_s21, %s396_s21 }
  0x1f   :  { %v51_v12 = vld [vmem:[#allocation5 + $0x60] sm:$0xff]  ;;  %v50_v15 = vld [vmem:[#allocation5 + $0x58] sm:$0xff]  ;;  %v81_v18 = vld [vmem:[#allocation5 + $0x150] sm:$0xff] }
  0x20   :  { %v456_v17 = vld [vmem:[#allocation2] sm:$0xff]  ;;  %v49_v19 = vld [vmem:[#allocation5 + $0x50] sm:$0xff]  ;;  %v64_v20 = vld [vmem:[#allocation5 + $0xc8] sm:$0xff]  ;;  %p403_p13 = por %p402_p12, %p401_p11 }
  0x21   :  { %317 = vmatpush3.xpose.msra.mxu1 %v85_v5  ;;  %266 = vmatpush3.xpose.msra.mxu0 %v53_v6  ;;  %v80_v21 = vld [vmem:[#allocation5 + $0x148] sm:$0xff]  ;;  %v63_v23 = vld [vmem:[#allocation5 + $0xc0] sm:$0xff]  ;;  %v62_v26 = vld [vmem:[#allocation5 + $0xb8] sm:$0xff] }
  0x22   :  { %318 = vmatprep.subr.mxu1 %v426_v0  ;;  %267 = vmatprep.subr.mxu0 %v68_v7  ;;  %v48_v22 = vld [vmem:[#allocation5 + $0x48] sm:$0xff]  ;;  %v79_v24 = vld [vmem:[#allocation5 + $0x140] sm:$0xff]  ;;  %v78_v27 = vld [vmem:[#allocation5 + $0x138] sm:$0xff]  ;;  %p404_p0 = pnand %p403_p13, %p397_p10 }
  0x23   :  { %295 = vmatprep.mubr.f32.mxu0 %v456_v17  ;;  %v47_v25 = vld [vmem:[#allocation5 + $0x40] sm:$0xff]  ;;  %v46_v28 = vld [vmem:[#allocation5 + $0x38] sm:$0xff]  ;;  %v61_v29 = vld [vmem:[#allocation5 + $0xb0] sm:$0xff] }
  0x24   :  { %v77_v30 = vld [vmem:[#allocation5 + $0x130] sm:$0xff]  ;;  %v60_v32 = vld [vmem:[#allocation5 + $0xa8] sm:$0xff]  ;;  %v59_v35 = vld [vmem:[#allocation5 + $0xa0] sm:$0xff] }
  0x25   :  { %319 = vmatpush3.xpose.msra.mxu1 %v84_v8  ;;  %268 = vmatpush3.xpose.msra.mxu0 %v52_v9  ;;  %v45_v31 = vld [vmem:[#allocation5 + $0x30] sm:$0xff]  ;;  %v76_v33 = vld [vmem:[#allocation5 + $0x128] sm:$0xff]  ;;  %v75_v36 = vld [vmem:[#allocation5 + $0x120] sm:$0xff] }
  0x26   :  { %320 = vmatprep.subr.mxu1 %v426_v0  ;;  %269 = vmatprep.subr.mxu0 %v67_v10  ;;  %v44_v34 = vld [vmem:[#allocation5 + $0x28] sm:$0xff]  ;;  %v43_v37 = vld [vmem:[#allocation5 + $0x20] sm:$0xff]  ;;  %v58_v38 = vld [vmem:[#allocation5 + $0x98] sm:$0xff] }
  0x27   :  { %v74_v39 = vld [vmem:[#allocation5 + $0x118] sm:$0xff]  ;;  %v57_v41 = vld [vmem:[#allocation5 + $0x90] sm:$0xff]  ;;  %v56_v44 = vld [vmem:[#allocation5 + $0x88] sm:$0xff] }
  0x28   :  { %v42_v40 = vld [vmem:[#allocation5 + $0x18] sm:$0xff]  ;;  %v73_v42 = vld [vmem:[#allocation5 + $0x110] sm:$0xff]  ;;  %v72_v45 = vld [vmem:[#allocation5 + $0x108] sm:$0xff] }
  0x29   :  { %321 = vmatpush3.xpose.msra.mxu1 %v83_v11  ;;  %270 = vmatpush3.xpose.msra.mxu0 %v51_v12  ;;  %v41_v43 = vld [vmem:[#allocation5 + $0x10] sm:$0xff]  ;;  %v40_v46 = vld [vmem:[#allocation5 + $0x8] sm:$0xff]  ;;  %v55_v47 = vld [vmem:[#allocation5 + $0x80] sm:$0xff] }
  0x2a   :  { %322 = vmatprep.subr.mxu1 %v426_v0  ;;  %271 = vmatprep.subr.mxu0 %v66_v13  ;;  %v71_v48 = vld [vmem:[#allocation5 + $0x100] sm:$0xff] }
  0x2b   :  { %v39_v49 = vld [vmem:[#allocation5] sm:$0xff] }
  0x2d   :  { %323 = vmatpush3.xpose.msra.mxu1 %v82_v14  ;;  %272 = vmatpush3.xpose.msra.mxu0 %v50_v15 }
  0x2e   :  { %324 = vmatprep.subr.mxu1 %v426_v0  ;;  %273 = vmatprep.subr.mxu0 %v65_v16 }
  0x31   :  { %325 = vmatpush3.xpose.msra.mxu1 %v81_v18  ;;  %274 = vmatpush3.xpose.msra.mxu0 %v49_v19 }
  0x32   :  { %326 = vmatprep.subr.mxu1 %v426_v0  ;;  %275 = vmatprep.subr.mxu0 %v64_v20 }
  0x35   :  { %327 = vmatpush3.xpose.msra.mxu1 %v80_v21  ;;  %276 = vmatpush3.xpose.msra.mxu0 %v48_v22 }
  0x36   :  { %328 = vmatprep.subr.mxu1 %v426_v0  ;;  %277 = vmatprep.subr.mxu0 %v63_v23 }
  0x39   :  { %329 = vmatpush3.xpose.msra.mxu1 %v79_v24  ;;  %278 = vmatpush3.xpose.msra.mxu0 %v47_v25 }
  0x3a   :  { %330 = vmatprep.subr.mxu1 %v426_v0  ;;  %279 = vmatprep.subr.mxu0 %v62_v26 }
  0x3d   :  { %331 = vmatpush3.xpose.msra.mxu1 %v78_v27  ;;  %280 = vmatpush3.xpose.msra.mxu0 %v46_v28 }
  0x3e   :  { %332 = vmatprep.subr.mxu1 %v426_v0  ;;  %281 = vmatprep.subr.mxu0 %v61_v29 }
  0x41   :  { %333 = vmatpush3.xpose.msra.mxu1 %v77_v30  ;;  %282 = vmatpush3.xpose.msra.mxu0 %v45_v31 }
  0x42   :  { %334 = vmatprep.subr.mxu1 %v426_v0  ;;  %283 = vmatprep.subr.mxu0 %v60_v32 }
  0x45   :  { %335 = vmatpush3.xpose.msra.mxu1 %v76_v33  ;;  %284 = vmatpush3.xpose.msra.mxu0 %v44_v34 }
  0x46   :  { %336 = vmatprep.subr.mxu1 %v426_v0  ;;  %285 = vmatprep.subr.mxu0 %v59_v35 }
  0x49   :  { %337 = vmatpush3.xpose.msra.mxu1 %v75_v36  ;;  %286 = vmatpush3.xpose.msra.mxu0 %v43_v37 }
  0x4a   :  { %338 = vmatprep.subr.mxu1 %v426_v0  ;;  %287 = vmatprep.subr.mxu0 %v58_v38 }
  0x4d   :  { %339 = vmatpush3.xpose.msra.mxu1 %v74_v39  ;;  %288 = vmatpush3.xpose.msra.mxu0 %v42_v40 }
  0x4e   :  { %340 = vmatprep.subr.mxu1 %v426_v0  ;;  %289 = vmatprep.subr.mxu0 %v57_v41 }
  0x51   :  { %341 = vmatpush3.xpose.msra.mxu1 %v73_v42  ;;  %290 = vmatpush3.xpose.msra.mxu0 %v41_v43 }
  0x52   :  { %342 = vmatprep.subr.mxu1 %v426_v0  ;;  %291 = vmatprep.subr.mxu0 %v56_v44 }
  0x55   :  { %343 = vmatpush3.xpose.msra.mxu1 %v72_v45  ;;  %292 = vmatpush3.xpose.msra.mxu0 %v40_v46 }
  0x56   :  { %344 = vmatprep.subr.mxu1 %v426_v0  ;;  %293 = vmatprep.subr.mxu0 %v55_v47 }
  0x59   :  { %345 = vmatpush3.xpose.msra.mxu1 %v71_v48  ;;  %294 = vmatpush3.xpose.msra.mxu0 %v39_v49 }
  0x5c   :  { %347 = vmatmul.mubr.f32.vlgmr.msra.gmra.mxu1 %v456_v17  ;;  %296 = vmatmul.mubr.f32.vlgmr.msra.gmra.mxu0 %v456_v17 }
 0x11c   :  { %v224_v50 = vpop.f32.mrf.mxu1  ;;  %v153_v51 = vpop.f32.mrf.mxu0 }
 0x11d   :  { %v262_v52 = vpack.c.bf16 %v224_v50, %v224_v50 }
 0x11e   :  { %v348_v53 = vpop.f32.mrf.mxu1  ;;  %v155_v54 = vpop.f32.mrf.mxu0 }
 0x11f   :  { %242 = vst [vmem:[#allocation7 + $0x8] sm:$0xf] %v262_v52  ;;  %v261_v55 = vpack.c.bf16 %v155_v54, %v153_v51 }
 0x121   :  { %241 = vst [vmem:[#allocation7] sm:$0xff] %v261_v55 }
 0x122   :  { %407 = shalt.err (!%p404_p0)
}
 0x123   :  { %252 = dma.vmem_to_hbm [thread:$0]  %s250_s1, 192, %s477_s2, [#allocation4]  }
 0x124   :  { %420 = dma.done.wait [#allocation4], 192  }
 0x125   :  { %421 = vsyncadd [#allocation4], 4294967104 }
 0x126   :  { %256 = vsyncpa [#allocation3], 1 }
 0x127   :  { %257 = vsyncpa [#allocation6], 1 }
 0x128   :  { %258 = vsyncpa [#allocation4], 1 }

</bundles_post_ra>
